<compile_context>
chip_gen: v7x
topology: tpu7x:2x2x1
jax: 0.10.0
libtpu: 0.0.40
codegen_flags: <defaults>
</compile_context>

<pallas_src>
import functools

import jax
import jax.numpy as jnp
from jax.experimental import pallas as pl
from jax.experimental.pallas import tpu as pltpu


def _golu_clamp_kernel(x_ref, o_ref, *, bf16_gate: bool):
    x = x_ref[...]
    if bf16_gate:
        # v6e/v7x bf16 path: inner exp in f32 for accuracy, outer exp and the
        # final multiply in bf16 (native bf16 EUP -> 2x exp throughput, fewer
        # cast VALU ops and half the vreg pressure).
        inner = jnp.exp(-jnp.clip(x.astype(jnp.float32), -10.0, 10.0))
        gate = jnp.exp(-inner.astype(x.dtype))
        o_ref[...] = x * gate
    else:
        xf = x.astype(jnp.float32)
        gate = jnp.exp(-jnp.exp(-jnp.clip(xf, -10.0, 10.0)))
        o_ref[...] = (xf * gate).astype(o_ref.dtype)


def _device_kind() -> str:
    try:
        return jax.devices()[0].device_kind.lower()
    except Exception:
        return ""


def _pick_block(total: int, unit: int, target: int) -> int:
    """Block length along the tiled axis.

    Returns either `total` (single full block) or a multiple of `unit`.
    Caps the block so the grid has >=4 steps (>=2 for smaller arrays) for
    pipeline overlap and v7x megacore sharding.
    """
    if total <= unit:
        return total
    blk = max(unit, (min(target, total) // unit) * unit)
    for steps in (4, 2):
        if total >= steps * unit:
            cap = max(unit, (total // steps // unit) * unit)
            blk = min(blk, cap)
            break
    # Never exceed the largest unit-multiple <= total (ragged last block is
    # masked by Pallas).
    return min(blk, (total // unit) * unit)


def _run_pallas(x_nd, block_shape, index_map, grid, vmem_limit, bf16_gate, n, itemsize):
    kernel = functools.partial(_golu_clamp_kernel, bf16_gate=bf16_gate)
    return pl.pallas_call(
        kernel,
        out_shape=jax.ShapeDtypeStruct(x_nd.shape, x_nd.dtype),
        grid_spec=pltpu.PrefetchScalarGridSpec(
            num_scalar_prefetch=0,
            grid=grid,
            in_specs=[pl.BlockSpec(block_shape, index_map)],
            out_specs=pl.BlockSpec(block_shape, index_map),
        ),
        compiler_params=pltpu.CompilerParams(
            dimension_semantics=("parallel",),
            vmem_limit_bytes=vmem_limit,
        ),
        cost_estimate=pl.CostEstimate(
            flops=6 * n,               # clamp + 2 negations + mul + casts
            transcendentals=2 * n,     # two exps per element
            bytes_accessed=2 * n * itemsize,
        ),
    )(x_nd)


def golu_clamp(x: jax.Array, *, target_block_bytes: int | None = None) -> jax.Array:
    """Elementwise GoLU (clamped): x * exp(-exp(-clamp(x, -10, 10)))."""
    orig_shape = x.shape
    dtype = x.dtype
    n = x.size
    if n == 0:
        return x

    kind = _device_kind()
    is_v7 = "v7" in kind
    pre_v6 = any(t in kind for t in ("v2", "v3", "v4", "v5"))  # no bf16 EUP/VPU

    # Generation-aware block / scoped-VMEM sizing.
    if target_block_bytes is None:
        target_block_bytes = (4 if is_v7 else 8) * 1024 * 1024
    vmem_limit = (32 if is_v7 else 64) * 1024 * 1024

    itemsize = jnp.dtype(dtype).itemsize
    # Native sublane packing unit per dtype width (f32: 8, bf16: 16, int8/fp8: 32).
    row_unit = {4: 8, 2: 16, 1: 32}.get(itemsize, 8)
    target_elems = max(1, target_block_bytes // itemsize)

    bf16_gate = (dtype == jnp.bfloat16) and not pre_v6

    x_flat = jnp.ravel(x)

    # Widest lane dimension (multiple of 128) that divides n -> unmasked,
    # full-width stores and long contiguous DMA rows, zero padding.
    lane = 0
    for w in (1024, 512, 256, 128):
        if n % w == 0:
            lane = w
            break

    if lane:
        rows = n // lane
        x2d = x_flat.reshape(rows, lane)
        block_rows = _pick_block(rows, row_unit, max(1, target_elems // lane))
        grid = (pl.cdiv(rows, block_rows),)
        out = _run_pallas(
            x2d, (block_rows, lane), lambda i: (i, 0), grid,
            vmem_limit, bf16_gate, n, itemsize,
        )
    else:
        # Ragged path: n % 128 != 0.  Run a 1-D kernel over the flat array;
        # Pallas masks the ragged last block (no pad, no concat, no slice).
        # Masked garbage is harmless: the clamp bounds both exps, and
        # out-of-range stores never reach HBM.
        unit = 128 * row_unit
        block_n = _pick_block(n, unit, target_elems)
        grid = (pl.cdiv(n, block_n),)
        out = _run_pallas(
            x_flat, (block_n,), lambda i: (i,), grid,
            vmem_limit, bf16_gate, n, itemsize,
        )

    return out.reshape(orig_shape)


def golu_clamp_ref(x: jax.Array) -> jax.Array:
    xc = jnp.clip(x, -10.0, 10.0)
    return x * jnp.exp(-jnp.exp(-xc))


if __name__ == "__main__":
    key = jax.random.PRNGKey(0)
    # NCHW, like PyTorch conv activations.
    x = jax.random.normal(key, (2, 4, 16, 16), dtype=jnp.float32) * 3.0

    y = golu_clamp(x)
    jax.block_until_ready(y)

    y_ref = golu_clamp_ref(x)
    assert y.shape == x.shape and y.dtype == x.dtype
    assert jnp.allclose(y, y_ref, atol=1e-5, rtol=1e-5), "mismatch vs reference"

    print("KERNEL_OK")
</pallas_src>

<mosaic_0001>
module attributes {stable_mosaic.version = 11 : i64} {
  func.func @_golu_clamp_kernel(%arg0: i32, %arg1: memref<2x1024xf32, #tpu.memory_space<vmem>>, %arg2: memref<2x1024xf32, #tpu.memory_space<vmem>>) attributes {dimension_semantics = [#tpu.dimension_semantics<parallel>], iteration_bounds = array<i64: 1>, scalar_prefetch = 0 : i64, scratch_operands = 0 : i64, tpu.core_type = #tpu.core_type<tc>, window_params = [{transform_indices = @transform_0, window_bounds = array<i64: 2, 1024>}, {transform_indices = @transform_1, window_bounds = array<i64: 2, 1024>}]} {
    %c0 = arith.constant 0 : index
    %c0_0 = arith.constant 0 : index
    %0 = vector.load %arg1[%c0, %c0_0] : memref<2x1024xf32, #tpu.memory_space<vmem>>, vector<2x1024xf32>
    %cst = arith.constant -1.000000e+01 : f32
    %cst_1 = arith.constant 1.000000e+01 : f32
    %1 = vector.broadcast %cst : f32 to vector<2x1024xf32>
    %2 = arith.maximumf %1, %0 : vector<2x1024xf32>
    %3 = vector.broadcast %cst_1 : f32 to vector<2x1024xf32>
    %4 = arith.minimumf %3, %2 : vector<2x1024xf32>
    %cst_2 = arith.constant 0.000000e+00 : f32
    %5 = vector.broadcast %cst_2 : f32 to vector<2x1024xf32>
    %6 = arith.subf %5, %4 : vector<2x1024xf32>
    %7 = math.exp %6 : vector<2x1024xf32>
    %cst_3 = arith.constant 0.000000e+00 : f32
    %8 = vector.broadcast %cst_3 : f32 to vector<2x1024xf32>
    %9 = arith.subf %8, %7 : vector<2x1024xf32>
    %10 = math.exp %9 : vector<2x1024xf32>
    %11 = arith.mulf %0, %10 : vector<2x1024xf32>
    %c0_4 = arith.constant 0 : index
    %c0_5 = arith.constant 0 : index
    %12 = vector.load %arg2[%c0_4, %c0_5] : memref<2x1024xf32, #tpu.memory_space<vmem>>, vector<2x1024xf32>
    tpu.vector_store %arg2[%c0_4, %c0_5], %11 {strides = array<i32>} : memref<2x1024xf32, #tpu.memory_space<vmem>>, vector<2x1024xf32>,
    return
  }
  func.func @transform_0(%arg0: i32) -> (i32, i32) {
    %c0_i32 = arith.constant 0 : i32
    %c0_i32_0 = arith.constant 0 : i32
    return %arg0, %c0_i32 : i32, i32
  }
  func.func @transform_1(%arg0: i32) -> (i32, i32) {
    %c0_i32 = arith.constant 0 : i32
    %c0_i32_0 = arith.constant 0 : i32
    return %arg0, %c0_i32 : i32, i32
  }
}

</mosaic_0001>

<bundles_post_ra>
// kernel: tpu_custom_call.1
= control target key start
LH: loop header
LB: loop body
LE: loop exit
PB: predicated region body
PF: predicated region fallthrough
CT: control target
= control target key end

     0   :  { %6 = vsyncpa [#allocation3], 0  ;;  %s154_s0 = inlined_call_operand.hbm [shape: f32[2,1024], index: 0, kind: input, shape index: {}]   ;;  %s155_s1 = inlined_call_operand.hbm [shape: f32[2,1024], index: 1, kind: output, shape index: {}]  }
   0x1   :  { %7 = vsyncpa [#allocation4], 0  ;;  %s118_s6 = smov [#allocation2]   ;;  %s70_s10 = scalar_lea.hbm %s154_s0, 256 }
   0x2   :  { %s14_s7 = sshll.u32 %s118_s6, 4  ;;  %p71_p0 = scmp.ne.s32.totalorder %s154_s0, %s70_s10  ;;  %s15_s7 = int_to_ptr.vmem [resolvable:$true] %s14_s7 }
   0x3   :  { %p74_p1 = scmp.lt.u32.totalorder %s70_s10, %s154_s0 }
   0x5   :  { %p76_p2 = pnand %p74_p1, %p71_p0 }
   0x7   :  { %79 = shalt.err (!%p76_p2)
}
   0x8   :  { %s80_s15 = scalar_lea.vmem %s15_s7, 256  ;;  %p85_p4 = scmp.lt.s32.totalorder %s15_s7, %s15_s7 }
   0x9   :  { %p81_p3 = scmp.ne.s32.totalorder %s15_s7, %s80_s15  ;;  %p86_p5 = scmp.lt.s32.totalorder %s80_s15, %s80_s15 }
   0xb   :  { %p87_p6 = por %p86_p5, %p85_p4 }
   0xd   :  { %p88_p7 = pnand %p87_p6, %p81_p3 }
   0xf   :  { %91 = shalt.err (!%p88_p7)
}
  0x10   :  { %17 = dma.hbm_to_vmem [thread:$0]  %s154_s0, 256, %s15_s7, [#allocation3]  }
  0x11   :  { %114 = dma.done.wait [#allocation3], 256  }
  0x12   :  { %115 = vsyncadd [#allocation3], 4294967040  ;;  %v21_v0 = vld [vmem:[#allocation2] sm:$0xff]  ;;  %v22_v1 = vld [vmem:[#allocation2 + $0x8] sm:$0xff]  ;;  %s119_s0 = smov [#allocation5]  }
  0x13   :  { %v58_v2 = vclamps-f32 %v21_v0, 10.0  ;;  %v59_v3 = vclamps-f32 %v22_v1, 10.0  ;;  %s49_s18 = sshll.u32 %s119_s0, 4  ;;  %s50_s18 = int_to_ptr.vmem [resolvable:$true] %s49_s18 }
  0x14   :  { %s92_s19 = scalar_lea.vmem %s50_s18, 256  ;;  %p97_p9 = scmp.lt.s32.totalorder %s50_s18, %s50_s18 }
  0x15   :  { %v27_v4 = vsub.f32 0.0, %v58_v2  ;;  %v28_v5 = vsub.f32 0.0, %v59_v3  ;;  %p93_p8 = scmp.ne.s32.totalorder %s50_s18, %s92_s19  ;;  %p98_p10 = scmp.lt.s32.totalorder %s92_s19, %s92_s19 }
  0x17   :  { %v29_v6 = vmul.f32 1.442695, %v27_v4  ;;  %v31_v7 = vmul.f32 1.442695, %v28_v5  ;;  %p99_p11 = por %p98_p10, %p97_p9 }
  0x19   :  { %62 = vpow2.f32 %v29_v6  ;;  %p100_p12 = pnand %p99_p11, %p93_p8 }
  0x1a   :  { %64 = vpow2.f32 %v31_v7 }
  0x23   :  { %v63_v8 = vpop.eup %62 }
  0x24   :  { %v65_v9 = vpop.eup %64  ;;  %v33_v10 = vsub.f32 0.0, %v63_v8 }
  0x25   :  { %v34_v11 = vsub.f32 0.0, %v65_v9 }
  0x26   :  { %v35_v12 = vmul.f32 1.442695, %v33_v10 }
  0x27   :  { %v37_v13 = vmul.f32 1.442695, %v34_v11 }
  0x28   :  { %66 = vpow2.f32 %v35_v12 }
  0x29   :  { %68 = vpow2.f32 %v37_v13 }
  0x32   :  { %v67_v14 = vpop.eup %66 }
  0x33   :  { %v69_v15 = vpop.eup %68  ;;  %v39_v16 = vmul.f32 %v67_v14, %v21_v0 }
  0x34   :  { %v40_v17 = vmul.f32 %v69_v15, %v22_v1 }
  0x35   :  { %41 = vst [vmem:[#allocation5] sm:$0xff] %v39_v16 }
  0x36   :  { %42 = vst [vmem:[#allocation5 + $0x8] sm:$0xff] %v40_v17 }
  0x37   :  { %103 = shalt.err (!%p100_p12)
}
  0x38   :  { %s104_s22 = scalar_lea.hbm %s155_s1, 256 }
  0x39   :  { %p105_p13 = scmp.ne.s32.totalorder %s155_s1, %s104_s22  ;;  %p108_p0 = scmp.lt.u32.totalorder %s104_s22, %s155_s1 }
  0x3b   :  { %p110_p1 = pnand %p108_p0, %p105_p13 }
  0x3d   :  { %113 = shalt.err (!%p110_p1)
}
  0x3e   :  { %52 = dma.vmem_to_hbm [thread:$0]  %s50_s18, 256, %s155_s1, [#allocation4]  }
  0x3f   :  { %116 = dma.done.wait [#allocation4], 256  }
  0x40   :  { %117 = vsyncadd [#allocation4], 4294967040 }
  0x41   :  { %56 = vsyncpa [#allocation3], 1 }
  0x42   :  { %57 = vsyncpa [#allocation4], 1 }

</bundles_post_ra>
